<compile_context>
chip_gen: v6e
topology: v6e:2x2x1
jax: 0.10.0
libtpu: 0.0.40
codegen_flags: <defaults>
</compile_context>

<pallas_src>
import functools

import jax
import jax.numpy as jnp
from jax.experimental import pallas as pl
from jax.experimental.pallas import tpu as pltpu


_DMA_DEPTH = 4               # max in-flight HBM->HBM DMAs (path A)
_HBM_BLOCK_BYTES = 8 << 20   # per-grid-step output payload target (path A)
_VMEM_BLOCK_BYTES = 6 << 20  # per-step VMEM budget (path B), v5e-safe (<16 MiB)
_MIN_RUN_BYTES = 512         # below this, strided crop DMA efficiency collapses


def _largest_divisor_leq(n: int, cap: int) -> int:
    """Largest divisor of n that is <= cap (at least 1)."""
    cap = max(1, min(n, cap))
    for d in range(cap, 0, -1):
        if n % d == 0:
            return d
    return 1


def _hbm_crop_kernel(x_hbm, o_hbm, sems, *, block_planes, margin, target, depth):
    """Path A: direct strided HBM->HBM crop copies, `depth` DMAs in flight."""
    b = pl.program_id(0)
    nb = pl.num_programs(0)

    def copy_desc(step, slot):
        off = pl.multiple_of(step * block_planes, block_planes)
        src = x_hbm.at[pl.ds(off, block_planes),
                       pl.ds(margin, target),
                       pl.ds(margin, target)]
        dst = o_hbm.at[pl.ds(off, block_planes), :, :]
        return pltpu.make_async_copy(src, dst, sems.at[slot])

    # Retire the copy issued `depth` steps ago (it used this step's slot).
    @pl.when(b >= depth)
    def _retire():
        copy_desc(b - depth, b % depth).wait()

    copy_desc(b, b % depth).start()

    # Last step: drain every copy still in flight (steps b-depth+1 .. b).
    @pl.when(b == nb - 1)
    def _drain():
        for d in range(depth):
            @pl.when(b - d >= 0)
            def _():
                copy_desc(b - d, (b - d) % depth).wait()


def _vmem_crop_kernel(x_hbm, o_ref, row_buf, sem, *, block_planes, margin, target):
    """Path B (small T): DMA full-width cropped rows (contiguous T*W runs per
    plane) into VMEM, then lane-crop into the pipelined output block."""
    b = pl.program_id(0)
    off = pl.multiple_of(b * block_planes, block_planes)
    src = x_hbm.at[pl.ds(off, block_planes), pl.ds(margin, target), :]
    cp = pltpu.make_async_copy(src, row_buf, sem)
    cp.start()
    cp.wait()
    o_ref[...] = row_buf[:, :, margin:margin + target]


def skip_crop(x: jax.Array, source_size: int, target_size: int,
              *, max_block_bytes: int | None = None) -> jax.Array:
    """Center-crop x (NCHW) on H and W; matches the PyTorch `skip` module.

    As in the PyTorch module, the crop window is derived from the configured
    `source_size`, not from x's actual spatial size (bounds are asserted).
    """
    N, C, H, W = x.shape
    T = int(target_size)
    margin = (int(source_size) - T) // 2
    assert margin >= 0
    assert margin + T <= H and margin + T <= W

    P = N * C
    itemsize = jnp.dtype(x.dtype).itemsize
    x_planes = x.reshape(P, H, W)
    out_plane_bytes = T * T * itemsize

    if T * itemsize >= _MIN_RUN_BYTES:
        # ---- Path A: pipelined strided HBM->HBM DMAs (no VMEM round trip). --
        budget = _HBM_BLOCK_BYTES if max_block_bytes is None else max_block_bytes
        blk = _largest_divisor_leq(P, max(1, budget // out_plane_bytes))
        num_blocks = P // blk
        depth = max(1, min(_DMA_DEPTH, num_blocks))
        kernel = functools.partial(_hbm_crop_kernel, block_planes=blk,
                                   margin=margin, target=T, depth=depth)
        out = pl.pallas_call(
            kernel,
            out_shape=jax.ShapeDtypeStruct((P, T, T), x.dtype),
            grid=(num_blocks,),
            in_specs=[pl.BlockSpec(memory_space=pl.ANY)],
            out_specs=pl.BlockSpec(memory_space=pl.ANY),
            scratch_shapes=[pltpu.SemaphoreType.DMA((depth,))],
            # Cross-step DMA pipeline relies on sequential grid execution.
            compiler_params=pltpu.CompilerParams(
                dimension_semantics=("arbitrary",)),
            cost_estimate=pl.CostEstimate(
                flops=0, transcendentals=0,
                bytes_accessed=int(2 * P * T * T * itemsize)),
        )(x_planes)
    else:
        # ---- Path B: small-T fallback (contiguous full-width row DMAs). -----
        per_plane_vmem = (T * W + 2 * T * T) * itemsize  # scratch + 2x out buf
        budget = _VMEM_BLOCK_BYTES if max_block_bytes is None else max_block_bytes
        blk = _largest_divisor_leq(P, max(1, budget // per_plane_vmem))
        num_blocks = P // blk
        kernel = functools.partial(_vmem_crop_kernel, block_planes=blk,
                                   margin=margin, target=T)
        out = pl.pallas_call(
            kernel,
            out_shape=jax.ShapeDtypeStruct((P, T, T), x.dtype),
            grid=(num_blocks,),
            in_specs=[pl.BlockSpec(memory_space=pl.ANY)],
            # Output block's last two dims equal the full array dims (T, T),
            # so the (8, 128) tiling constraint does not apply.
            out_specs=pl.BlockSpec((blk, T, T), lambda b: (b, 0, 0)),
            scratch_shapes=[pltpu.VMEM((blk, T, W), x.dtype),
                            pltpu.SemaphoreType.DMA(())],
            compiler_params=pltpu.CompilerParams(
                dimension_semantics=("parallel",)),
            cost_estimate=pl.CostEstimate(
                flops=0, transcendentals=0,
                bytes_accessed=int(P * T * W * itemsize + P * T * T * itemsize)),
        )(x_planes)

    return out.reshape(N, C, T, T)


if __name__ == "__main__":
    key = jax.random.PRNGKey(0)
    k1, k2 = jax.random.split(key)

    # --- Small-T path (module-scale shapes: batch=2, channels=4, 16 -> 8). ---
    N, C, src_sz, tgt_sz = 2, 4, 16, 8
    x_small = jax.random.normal(k1, (N, C, src_sz, src_sz), dtype=jnp.float32)
    out_small = jax.block_until_ready(skip_crop(x_small, src_sz, tgt_sz))
    m = (src_sz - tgt_sz) // 2
    ref_small = x_small[:, :, m:m + tgt_sz, m:m + tgt_sz]
    assert out_small.shape == (N, C, tgt_sz, tgt_sz)
    assert jnp.array_equal(out_small, ref_small), "small-T crop mismatch"

    # --- Large-T path: exercise pipelined HBM->HBM DMAs + drain logic. -------
    N2, C2, src2, tgt2 = 1, 6, 160, 128
    x_big = jax.random.normal(k2, (N2, C2, src2, src2), dtype=jnp.float32)
    # Force one plane per grid step (> DMA depth steps) so the in-flight /
    # retire / drain logic is actually executed.
    out_big = jax.block_until_ready(
        skip_crop(x_big, src2, tgt2, max_block_bytes=tgt2 * tgt2 * 4))
    m2 = (src2 - tgt2) // 2
    ref_big = x_big[:, :, m2:m2 + tgt2, m2:m2 + tgt2]
    assert out_big.shape == (N2, C2, tgt2, tgt2)
    assert jnp.array_equal(out_big, ref_big), "large-T crop mismatch"

    print("KERNEL_OK")
</pallas_src>

<mosaic_0001>
module attributes {stable_mosaic.version = 11 : i64} {
  func.func @_vmem_crop_kernel(%arg0: i32, %arg1: memref<8x16x16xf32, #tpu.memory_space<any>>, %arg2: memref<8x8x8xf32, #tpu.memory_space<vmem>>, %arg3: memref<8x8x16xf32, #tpu.memory_space<vmem>>, %arg4: memref<!tpu.dma_semaphore, #tpu.memory_space<semaphore_mem>>) attributes {dimension_semantics = [#tpu.dimension_semantics<parallel>], iteration_bounds = array<i64: 1>, scalar_prefetch = 0 : i64, scratch_operands = 2 : i64, tpu.core_type = #tpu.core_type<tc>, window_params = [{}, {transform_indices = @transform_1, window_bounds = array<i64: 8, 8, 8>}]} {
    %c8_i32 = arith.constant 8 : i32
    %0 = arith.muli %arg0, %c8_i32 : i32
    %1 = tpu.assume_multiple %0, 8 : i32
    %c4_i32 = arith.constant 4 : i32
    %c0_i32 = arith.constant 0 : i32
    %2 = tpu.memref_slice %arg1[%1, %c4_i32, %c0_i32] : memref<8x16x16xf32, #tpu.memory_space<any>> -> memref<8x8x16xf32, #tpu.memory_space<any>>
    tpu.enqueue_dma source(%2 : memref<8x8x16xf32, #tpu.memory_space<any>>) target(%arg3 : memref<8x8x16xf32, #tpu.memory_space<vmem>>) target_semaphore(%arg4 : memref<!tpu.dma_semaphore, #tpu.memory_space<semaphore_mem>>)
    %c4_i32_0 = arith.constant 4 : i32
    %c0_i32_1 = arith.constant 0 : i32
    %3 = tpu.memref_slice %arg1[%1, %c4_i32_0, %c0_i32_1] : memref<8x16x16xf32, #tpu.memory_space<any>> -> memref<8x8x16xf32, #tpu.memory_space<any>>
    tpu.wait_dma2 semaphore(%arg4 : memref<!tpu.dma_semaphore, #tpu.memory_space<semaphore_mem>>) src(%3 : memref<8x8x16xf32, #tpu.memory_space<any>>) dst(%arg3 : memref<8x8x16xf32, #tpu.memory_space<vmem>>)
    %c0 = arith.constant 0 : index
    %c0_2 = arith.constant 0 : index
    %c4 = arith.constant 4 : index
    %4 = vector.load %arg3[%c0, %c0_2, %c4] : memref<8x8x16xf32, #tpu.memory_space<vmem>>, vector<8x8x8xf32>
    %c0_3 = arith.constant 0 : index
    %c0_4 = arith.constant 0 : index
    %c0_5 = arith.constant 0 : index
    %5 = vector.load %arg2[%c0_3, %c0_4, %c0_5] : memref<8x8x8xf32, #tpu.memory_space<vmem>>, vector<8x8x8xf32>
    tpu.vector_store %arg2[%c0_3, %c0_4, %c0_5], %4 {strides = array<i32>} : memref<8x8x8xf32, #tpu.memory_space<vmem>>, vector<8x8x8xf32>,
    return
  }
  func.func @transform_1(%arg0: i32) -> (i32, i32, i32) {
    %c0_i32 = arith.constant 0 : i32
    %c0_i32_0 = arith.constant 0 : i32
    %c0_i32_1 = arith.constant 0 : i32
    return %arg0, %c0_i32, %c0_i32_0 : i32, i32, i32
  }
}

</mosaic_0001>

<bundles_post_ra>
// kernel: tpu_custom_call.1
= control target key start
LH: loop header
LB: loop body
LE: loop exit
PB: predicated region body
PF: predicated region fallthrough
CT: control target
= control target key end

     0   :  { %6 = vsyncpa [#allocation5], 0  ;;  %s147_s9 = smov [#allocation2]   ;;  %s182_s0 = inlined_call_operand.hbm [shape: f32[8,16,16], index: 0, kind: input, shape index: {}]   ;;  %s183_s1 = inlined_call_operand.hbm [shape: f32[8,8,8], index: 1, kind: output, shape index: {}]  }
   0x1   :  { %s92_s8 = scalar_lea.hbm %s182_s0, 64  ;;  %s13_s10 = sshll.u32 %s147_s9, 4  ;;  %s14_s10 = int_to_ptr.vmem [resolvable:$true] %s13_s10 }
   0x2   :  { %s110_s11 = scalar_lea.vmem %s14_s10, 1024  ;;  %p115_p1 = scmp.lt.s32.totalorder %s14_s10, %s14_s10 }
   0x3   :  { %p111_p0 = scmp.ne.s32.totalorder %s14_s10, %s110_s11  ;;  %p116_p2 = scmp.lt.s32.totalorder %s110_s11, %s110_s11 }
   0x5   :  { %p117_p3 = por %p116_p2, %p115_p1 }
   0x7   :  { %p118_p4 = pnand %p117_p3, %p111_p0 }
   0x9   :  { %121 = shalt.err (!%p118_p4)  }
   0xa   :  { %s148_s12 = smov 256   ;;  %s149_s13 = smov 128  }
   0xb   :  { %s150_s14 = smov 8  }
   0xc   :  { %16 = dma.hbm_to_vmem [thread:$0]  %s92_s8, 1024, %s14_s10, [#allocation3], %s148_s12, %s149_s13, %s150_s14 }
   0xd   :  { %143 = dma.done.wait [#allocation3], 1024 }
   0xe   :  { %144 = vsyncadd [#allocation3], 4294966272  ;;  %v23_v0 = vld [vmem:[#allocation2 + $0x10] sm:$0xff]  ;;  %v21_v1 = vld [vmem:[#allocation2] sm:$0xff]  ;;  %s151_s0 = smov 124   ;;  %vm61_vm0 = vcmask 64512  }
   0xf   :  { %41 = vrot.lane.b32.xlu1 %v23_v0, %s151_s0  ;;  %37 = vrot.lane.b32.xlu0 %v21_v1, %s151_s0  ;;  %v24_v2 = vld [vmem:[#allocation2 + $0x18] sm:$0xff]  ;;  %v22_v3 = vld [vmem:[#allocation2 + $0x8] sm:$0xff]  ;;  %v25_v5 = vld [vmem:[#allocation2 + $0x20] sm:$0xff]  ;;  %s152_s15 = smov [#allocation4]  }
  0x10   :  { %v26_v4 = vld [vmem:[#allocation2 + $0x28] sm:$0xff]  ;;  %v28_v6 = vld [vmem:[#allocation2 + $0x38] sm:$0xff]  ;;  %v27_v7 = vld [vmem:[#allocation2 + $0x30] sm:$0xff]  ;;  %s75_s16 = sshll.u32 %s152_s15, 4  ;;  %s76_s16 = int_to_ptr.vmem [resolvable:$true] %s75_s16 }
  0x11   :  { %s123_s17 = scalar_lea.vmem %s76_s16, 1024  ;;  %p128_p6 = scmp.lt.s32.totalorder %s76_s16, %s76_s16 }
  0x12   :  { %p124_p5 = scmp.ne.s32.totalorder %s76_s16, %s123_s17  ;;  %p129_p7 = scmp.lt.s32.totalorder %s123_s17, %s123_s17 }
  0x13   :  { %43 = vrot.lane.b32.xlu1 %v24_v2, %s151_s0  ;;  %39 = vrot.lane.b32.xlu0 %v22_v3, %s151_s0 }
  0x14   :  { %p130_p8 = por %p129_p7, %p128_p6 }
  0x16   :  { %p131_p9 = pnand %p130_p8, %p124_p5 }
  0x17   :  { %47 = vrot.lane.b32.xlu1 %v26_v4, %s151_s0  ;;  %45 = vrot.lane.b32.xlu0 %v25_v5, %s151_s0 }
  0x1b   :  { %51 = vrot.lane.b32.xlu1 %v28_v6, %s151_s0  ;;  %49 = vrot.lane.b32.xlu0 %v27_v7, %s151_s0 }
  0x81   :  { %v42_v8 = vpop.permute.xlu1 %41  ;;  %v38_v9 = vpop.permute.xlu0 %37 }
  0x82   :  { %64 = vst.msk [vmem:[#allocation4 + $0x10] sm:$0xff] %vm61_vm0, %v42_v8  ;;  %62 = vst.msk [vmem:[#allocation4] sm:$0xff] %vm61_vm0, %v38_v9 }
  0x85   :  { %v44_v10 = vpop.permute.xlu1 %43  ;;  %v40_v11 = vpop.permute.xlu0 %39 }
  0x86   :  { %65 = vst.msk [vmem:[#allocation4 + $0x18] sm:$0xff] %vm61_vm0, %v44_v10  ;;  %63 = vst.msk [vmem:[#allocation4 + $0x8] sm:$0xff] %vm61_vm0, %v40_v11 }
  0x89   :  { %v48_v12 = vpop.permute.xlu1 %47  ;;  %v46_v13 = vpop.permute.xlu0 %45 }
  0x8a   :  { %67 = vst.msk [vmem:[#allocation4 + $0x28] sm:$0xff] %vm61_vm0, %v48_v12  ;;  %66 = vst.msk [vmem:[#allocation4 + $0x20] sm:$0xff] %vm61_vm0, %v46_v13 }
  0x8d   :  { %v52_v14 = vpop.permute.xlu1 %51  ;;  %v50_v15 = vpop.permute.xlu0 %49 }
  0x8e   :  { %69 = vst.msk [vmem:[#allocation4 + $0x38] sm:$0xff] %vm61_vm0, %v52_v14  ;;  %68 = vst.msk [vmem:[#allocation4 + $0x30] sm:$0xff] %vm61_vm0, %v50_v15 }
  0x8f   :  { %134 = shalt.err (!%p131_p9)
}
  0x90   :  { %81 = dma.vmem_to_hbm [thread:$0]  %s76_s16, 1024, %s183_s1, [#allocation5], %s149_s13, %s149_s13, %s150_s14  }
  0x91   :  { %145 = dma.done.wait [#allocation5], 1024  }
  0x92   :  { %146 = vsyncadd [#allocation5], 4294966272 }
  0x93   :  { %85 = vsyncpa [#allocation5], 1 }
  0x94   :  { %86 = vsyncmov [#allocation3] }
  0x97   :  { %s87_s20 = vpop.sfrf %86 }
  0x98   :  { %p93_p10 = scmp.ne.s32.totalorder %s87_s20, 0 }
  0x9a   :  { %91 = shalt.err (%p93_p10)  }

</bundles_post_ra>
